<compile_context>
chip_gen: v7x
topology: tpu7x:2x2x1
jax: 0.10.0
libtpu: 0.0.40
codegen_flags: <defaults>
</compile_context>

<pallas_src>
import numpy as np

import jax
import jax.numpy as jnp
from jax import lax
from jax.experimental import pallas as pl
from jax.experimental.pallas import tpu as pltpu

BN_EPS = 1e-5
MASK_FILL = -1e6


def _mmq_attention_kernel(q2_ref, k_ref, v_ref, madd_ref, wkt_ref,
                          ehead_ref, eval_ref, out_ref, attn_ref):
    tb, seq, d_in = k_ref.shape
    nhd = q2_ref.shape[-1]

    q2 = q2_ref[...]                 # (tb, nhd) f32; fc1_q+BN+fc2 and 1/temperature pre-folded
    kb = k_ref[...]                  # (tb, seq, d_in)  f32 or bf16
    vb = v_ref[...]                  # (tb, seq, d_in)  f32 or bf16
    madd = madd_ref[...]             # (tb, n_head, seq) f32: mask(0/-1e6) + per-(b,h) bk bias

    # ---- fc1_k: one flat GEMM (bias folded into madd on the host) ----
    kp = jnp.dot(kb.reshape(tb * seq, d_in), wkt_ref[...],
                 preferred_element_type=jnp.float32)                           # (tb*seq, nhd)
    kp3 = kp.reshape(tb, seq, nhd)

    # ---- scores for all heads, produced directly in lane-dense (batch, head, seq) ----
    # s[b,h,t] = sum_j ehead[h,j] * q2[b,j] * kp3[b,t,j]   (head reduction on the MXU)
    eqh = q2[:, None, :] * ehead_ref[...][None, :, :]                          # (tb, n_head, nhd)
    s = lax.dot_general(eqh, kp3,
                        dimension_numbers=(((2,), (2,)), ((0,), (0,))),
                        preferred_element_type=jnp.float32)                    # (tb, n_head, seq)
    s = s + madd

    # ---- softmax over seq (lane axis) ----
    m = jnp.max(s, axis=-1, keepdims=True)
    e = jnp.exp(s - m)
    denom = jnp.sum(e, axis=-1, keepdims=True)                                 # (tb, n_head, 1)
    inv = pl.reciprocal(denom, approx=True)
    inv = inv * (2.0 - denom * inv)   # one Newton step: full f32 accuracy, still off the VPU divide
    a = e * inv                                                                # (tb, n_head, seq)
    # TODO(synk): nn.Dropout(0.1) on the attention weights is a no-op in eval mode; omitted.

    # ---- context: contract seq on the MXU, then collapse the per-head block structure ----
    ctx = jnp.einsum('bhs,bsd->bhd', a.astype(vb.dtype), vb,
                     preferred_element_type=jnp.float32)                       # (tb, n_head, d_in)
    out = jnp.sum(ctx * eval_ref[...][None, :, :], axis=1)                     # (tb, d_in)

    out_ref[...] = out.astype(out_ref.dtype)
    attn_ref[...] = a.astype(attn_ref.dtype)


def _choose_batch_tile(sz_b, seq_pad, d_in, n_head, nhd, kv_bytes, vmem_budget_bytes):
    """Largest batch tile that keeps the (double-buffered) working set inside the VMEM budget.
    Single grid step when the whole batch fits; otherwise an 8-aligned tile (sublane rule)."""
    f32 = 4
    per_b = (2 * 2 * seq_pad * d_in * kv_bytes        # k + v tiles, double buffered
             + 2 * n_head * seq_pad * f32             # additive mask tile
             + 2 * nhd * f32                          # q2 tile
             + 2 * n_head * seq_pad * f32             # attn out tile
             + 2 * d_in * f32                         # main out tile
             + 2 * seq_pad * nhd * f32                # k-projection / score intermediates (rough)
             + n_head * (d_in + 4 * seq_pad) * f32)   # ctx + softmax temporaries (rough)
    fixed = 2 * d_in * nhd * kv_bytes + (n_head * nhd + n_head * d_in) * f32
    tb = max(1, (vmem_budget_bytes - fixed) // per_b)
    if tb >= sz_b:
        return sz_b
    tb = max(8, (tb // 8) * 8)
    return min(tb, sz_b)


def multi_head_master_query_attention(q, k, v, key_padding_mask, params, *, n_head, d_k,
                                      matmul_dtype=jnp.bfloat16):
    """Pallas implementation of MultiHeadMasterQueryAttention.forward (eval mode).

    q, k, v: (sz_b, seq_len, d_in) float32
    key_padding_mask: (n_head * sz_b, seq_len) float32 (1.0 = pad), head-major
                      (i.e. built like mask.repeat(n_head, 1) — matches the module's q/k layout).
    matmul_dtype: dtype used for the k/v DMA + MXU path (bf16 halves HBM bytes; f32 accumulate).
    Returns (output (n_head, sz_b, d_in//n_head), attn (n_head*sz_b, 1, seq_len)).
    """
    sz_b, seq_len, d_in = q.shape
    dv = d_in // n_head
    nhd = n_head * d_k
    inv_temperature = float(1.0 / np.power(d_k, 0.5))

    # ---------------- host-side (XLA) folding: the query branch never enters the kernel -------
    # mean(fc1_q(x)) == fc1_q(mean(x)); BN(eval) and fc2 are affine, so the whole branch is one
    # (d_in, nhd) GEMM; 1/temperature is folded into it as well.
    scale = params["gamma"] / jnp.sqrt(params["rv"] + BN_EPS)                  # (1, nhd)
    wq_eff = (params["wq"].T * scale) @ params["w2"].T                         # (d_in, nhd)
    bq_eff = (((params["bq"] - params["rm"]) * scale + params["beta"])
              @ params["w2"].T + params["b2"])                                 # (1, nhd)
    q2 = ((jnp.mean(q, axis=1) @ wq_eff + bq_eff) * inv_temperature).astype(jnp.float32)  # (b, nhd)

    # fc1_k bias contribution to the scores, folded into the additive tensor:
    #   bias[b,h] = sum_{j in head h} q2[b,j] * bk[j]
    bias_bh = (q2 * params["bk"]).reshape(sz_b, n_head, d_k).sum(axis=-1)      # (sz_b, n_head)

    # additive mask in lane-dense (batch, head, seq) layout (0 keep / -1e6 pad).
    mask_h = key_padding_mask.reshape(n_head, sz_b, seq_len)                   # head-major
    madd = jnp.where(mask_h > 0, MASK_FILL, 0.0).astype(jnp.float32).transpose(1, 0, 2)

    # pad seq to a multiple of 8 (padded steps fully masked) -> clean (8,128) layouts in-kernel.
    seq_pad = int(-(-seq_len // 8) * 8)
    if seq_pad != seq_len:
        pad_s = seq_pad - seq_len
        k = jnp.pad(k, ((0, 0), (0, pad_s), (0, 0)))
        v = jnp.pad(v, ((0, 0), (0, pad_s), (0, 0)))
        madd = jnp.pad(madd, ((0, 0), (0, 0), (0, pad_s)), constant_values=MASK_FILL)
    madd = madd + bias_bh[:, :, None]                                          # (b, n_head, seq_pad)

    kv = k.astype(matmul_dtype)
    vv = v.astype(matmul_dtype)
    wk_t = params["wk"].T.astype(matmul_dtype)                                 # (d_in, nhd)

    # constant 0/1 head-indicator matrices (tiny VMEM-resident inputs; no per-step iota/compare).
    e_head = jnp.asarray(np.kron(np.eye(n_head), np.ones((1, d_k))), jnp.float32)  # (n_head, nhd)
    e_val = jnp.asarray(np.kron(np.eye(n_head), np.ones((1, dv))), jnp.float32)    # (n_head, d_in)

    # ---------------- VMEM-budgeted batch tiling ------------------------------------------------
    try:
        vmem_cap = int(pltpu.get_tpu_info().vmem_capacity_bytes)
    except Exception:
        vmem_cap = 64 * 1024 * 1024          # conservative fallback (v7x per-core VMEM)
    vmem_budget = min(int(0.4 * vmem_cap), 48 * 1024 * 1024)   # ~26 MiB on v7x, bigger on v5e/v6e
    kv_bytes = jnp.dtype(matmul_dtype).itemsize
    tb = _choose_batch_tile(sz_b, seq_pad, d_in, n_head, nhd, kv_bytes, vmem_budget)

    sz_b_pad = int(-(-sz_b // tb) * tb)      # cdiv-style tiling: pad batch, slice results after
    if sz_b_pad != sz_b:
        pad_b = sz_b_pad - sz_b
        kv = jnp.pad(kv, ((0, pad_b), (0, 0), (0, 0)))
        vv = jnp.pad(vv, ((0, pad_b), (0, 0), (0, 0)))
        q2 = jnp.pad(q2, ((0, pad_b), (0, 0)))
        madd = jnp.pad(madd, ((0, pad_b), (0, 0), (0, 0)))
    grid = (sz_b_pad // tb,)                 # "parallel": multi-step grids shard across TCs (v7x)

    batch_map3 = lambda b: (b, 0, 0)
    batch_map2 = lambda b: (b, 0)
    const_map2 = lambda b: (0, 0)

    flops = (2 * sz_b_pad * seq_pad * d_in * nhd        # k projection
             + 2 * sz_b_pad * n_head * nhd * seq_pad    # score reduction
             + 2 * sz_b_pad * n_head * seq_pad * d_in)  # context
    bytes_accessed = (q2.size * 4 + kv.size * kv_bytes + vv.size * kv_bytes + madd.size * 4
                      + wk_t.size * kv_bytes + e_head.size * 4 + e_val.size * 4
                      + sz_b_pad * d_in * 4 + sz_b_pad * n_head * seq_pad * 4)

    out_k, attn_k = pl.pallas_call(
        _mmq_attention_kernel,
        out_shape=(
            jax.ShapeDtypeStruct((sz_b_pad, d_in), jnp.float32),
            jax.ShapeDtypeStruct((sz_b_pad, n_head, seq_pad), jnp.float32),
        ),
        grid=grid,
        in_specs=[
            pl.BlockSpec((tb, nhd), batch_map2),               # q2 (query branch fully pre-folded)
            pl.BlockSpec((tb, seq_pad, d_in), batch_map3),     # k
            pl.BlockSpec((tb, seq_pad, d_in), batch_map3),     # v
            pl.BlockSpec((tb, n_head, seq_pad), batch_map3),   # additive mask + bk bias
            pl.BlockSpec((d_in, nhd), const_map2),             # Wk^T (pre-transposed)
            pl.BlockSpec((n_head, nhd), const_map2),           # head indicator (0/1)
            pl.BlockSpec((n_head, d_in), const_map2),          # value indicator (0/1)
        ],
        out_specs=(
            pl.BlockSpec((tb, d_in), batch_map2),              # 2-D main output (dense stores)
            pl.BlockSpec((tb, n_head, seq_pad), batch_map3),   # attn, seq on lanes
        ),
        compiler_params=pltpu.CompilerParams(
            dimension_semantics=("parallel",),
            vmem_limit_bytes=int(min(vmem_cap * 0.85, 120 * 1024 * 1024)),
        ),
        cost_estimate=pl.CostEstimate(
            flops=flops,
            transcendentals=sz_b_pad * n_head * seq_pad,
            bytes_accessed=bytes_accessed,
        ),
    )(q2, kv, vv, madd, wk_t, e_head, e_val)

    # Layout plumbing on the XLA side (kernel outputs stay lane-dense / batch-major).
    output = out_k[:sz_b].reshape(sz_b, n_head, dv).transpose(1, 0, 2)             # (n_head, b, dv)
    attn = attn_k[:sz_b, :, :seq_len].transpose(1, 0, 2).reshape(n_head * sz_b, 1, seq_len)
    return output, attn


def reference_jax(q, k, v, key_padding_mask, params, *, n_head, d_k):
    """Pure-JAX replica of the PyTorch forward (unfused math), for correctness checking."""
    sz_b, seq_len, d_in = q.shape
    dv = d_in // n_head
    temperature = float(np.power(d_k, 0.5))

    qp = q @ params["wq"].T + params["bq"]                                     # (b, s, nhd)
    qm = qp.reshape(sz_b, seq_len, n_head, d_k).mean(axis=1)                   # (b, n_head, d_k)
    qf = qm.reshape(sz_b, n_head * d_k)
    qbn = (qf - params["rm"]) / jnp.sqrt(params["rv"] + BN_EPS) * params["gamma"] + params["beta"]
    q2 = qbn @ params["w2"].T + params["b2"]
    q2 = q2.reshape(sz_b, n_head, d_k).transpose(1, 0, 2).reshape(n_head * sz_b, d_k)

    kp = (k @ params["wk"].T + params["bk"]).reshape(sz_b, seq_len, n_head, d_k)
    kp = kp.transpose(2, 0, 1, 3).reshape(n_head * sz_b, seq_len, d_k)

    v_h = jnp.stack(jnp.split(v, n_head, axis=-1), axis=0).reshape(n_head * sz_b, seq_len, dv)

    attn = jnp.einsum("bd,bsd->bs", q2, kp) / temperature
    attn = jnp.where(key_padding_mask > 0, MASK_FILL, attn)
    attn = jax.nn.softmax(attn, axis=-1)
    out = jnp.einsum("bs,bsd->bd", attn, v_h)

    return out.reshape(n_head, sz_b, dv), attn.reshape(n_head * sz_b, 1, seq_len)


if __name__ == "__main__":
    # Small shapes consistent with the module: batch=2, seq=8, d_in=32, n_head=4, d_k=8.
    sz_b, seq_len, d_in = 2, 8, 32
    n_head, d_k = 4, 8
    nhd = n_head * d_k

    key = jax.random.PRNGKey(0)
    ks = jax.random.split(key, 12)

    q = jax.random.normal(ks[0], (sz_b, seq_len, d_in), jnp.float32)
    k = jax.random.normal(ks[1], (sz_b, seq_len, d_in), jnp.float32)
    v = jax.random.normal(ks[2], (sz_b, seq_len, d_in), jnp.float32)

    # Deterministic padding mask: batch 0 pads last 2 steps, batch 1 no padding.
    lens = jnp.array([seq_len - 2, seq_len], jnp.int32)
    mask_b = (jnp.arange(seq_len)[None, :] >= lens[:, None]).astype(jnp.float32)  # (sz_b, seq)
    key_padding_mask = jnp.tile(mask_b[None, :, :], (n_head, 1, 1)).reshape(n_head * sz_b, seq_len)

    # Deterministic parameter init (nn.init.normal_ with std=sqrt(2/d_k) for fc1_{q,k} weights).
    std1 = float(np.sqrt(2.0 / d_k))
    params = {
        "wq": std1 * jax.random.normal(ks[3], (nhd, d_in), jnp.float32),
        "bq": 0.05 * jax.random.normal(ks[4], (1, nhd), jnp.float32),
        "wk": std1 * jax.random.normal(ks[5], (nhd, d_in), jnp.float32),
        "bk": 0.05 * jax.random.normal(ks[6], (1, nhd), jnp.float32),
        "gamma": 1.0 + 0.1 * jax.random.normal(ks[7], (1, nhd), jnp.float32),
        "beta": 0.1 * jax.random.normal(ks[8], (1, nhd), jnp.float32),
        "rm": 0.1 * jax.random.normal(ks[9], (1, nhd), jnp.float32),
        "rv": 1.0 + 0.1 * jax.random.uniform(ks[10], (1, nhd), jnp.float32),
        "w2": (1.0 / np.sqrt(nhd)) * jax.random.normal(ks[11], (nhd, nhd), jnp.float32),
        "b2": jnp.zeros((1, nhd), jnp.float32),
    }

    out_ref, attn_ref = reference_jax(
        q, k, v, key_padding_mask, params, n_head=n_head, d_k=d_k
    )

    # 1) full-f32 path: folded math only changes floating-point summation order -> tight tolerance.
    out32, attn32 = multi_head_master_query_attention(
        q, k, v, key_padding_mask, params, n_head=n_head, d_k=d_k, matmul_dtype=jnp.float32
    )
    out32, attn32 = jax.block_until_ready((out32, attn32))
    np.testing.assert_allclose(np.asarray(out32), np.asarray(out_ref), rtol=2e-4, atol=2e-4)
    np.testing.assert_allclose(np.asarray(attn32), np.asarray(attn_ref), rtol=2e-4, atol=2e-4)

    # 2) bf16 k/v DMA + MXU path (default; halves the dominant HBM bytes) -> bf16-level tolerance.
    out_bf, attn_bf = multi_head_master_query_attention(
        q, k, v, key_padding_mask, params, n_head=n_head, d_k=d_k, matmul_dtype=jnp.bfloat16
    )
    out_bf, attn_bf = jax.block_until_ready((out_bf, attn_bf))
    np.testing.assert_allclose(np.asarray(out_bf), np.asarray(out_ref), rtol=5e-2, atol=5e-2)
    np.testing.assert_allclose(np.asarray(attn_bf), np.asarray(attn_ref), rtol=5e-2, atol=5e-2)

    print("KERNEL_OK")
</pallas_src>

<mosaic_0001>
module attributes {stable_mosaic.version = 11 : i64} {
  func.func @_mmq_attention_kernel(%arg0: i32, %arg1: memref<2x32xf32, #tpu.memory_space<vmem>>, %arg2: memref<2x8x32xf32, #tpu.memory_space<vmem>>, %arg3: memref<2x8x32xf32, #tpu.memory_space<vmem>>, %arg4: memref<2x4x8xf32, #tpu.memory_space<vmem>>, %arg5: memref<32x32xf32, #tpu.memory_space<vmem>>, %arg6: memref<4x32xf32, #tpu.memory_space<vmem>>, %arg7: memref<4x32xf32, #tpu.memory_space<vmem>>, %arg8: memref<2x32xf32, #tpu.memory_space<vmem>>, %arg9: memref<2x4x8xf32, #tpu.memory_space<vmem>>) attributes {dimension_semantics = [#tpu.dimension_semantics<parallel>], iteration_bounds = array<i64: 1>, scalar_prefetch = 0 : i64, scratch_operands = 0 : i64, tpu.core_type = #tpu.core_type<tc>, window_params = [{transform_indices = @transform_0, window_bounds = array<i64: 2, 32>}, {transform_indices = @transform_1, window_bounds = array<i64: 2, 8, 32>}, {transform_indices = @transform_2, window_bounds = array<i64: 2, 8, 32>}, {transform_indices = @transform_3, window_bounds = array<i64: 2, 4, 8>}, {pipeline_mode = #tpu.pipeline_mode<synchronous>, transform_indices = @transform_4, window_bounds = array<i64: 32, 32>}, {pipeline_mode = #tpu.pipeline_mode<synchronous>, transform_indices = @transform_5, window_bounds = array<i64: 4, 32>}, {pipeline_mode = #tpu.pipeline_mode<synchronous>, transform_indices = @transform_6, window_bounds = array<i64: 4, 32>}, {transform_indices = @transform_7, window_bounds = array<i64: 2, 32>}, {transform_indices = @transform_8, window_bounds = array<i64: 2, 4, 8>}]} {
    %c0 = arith.constant 0 : index
    %c0_0 = arith.constant 0 : index
    %0 = vector.load %arg1[%c0, %c0_0] : memref<2x32xf32, #tpu.memory_space<vmem>>, vector<2x32xf32>
    %c0_1 = arith.constant 0 : index
    %c0_2 = arith.constant 0 : index
    %c0_3 = arith.constant 0 : index
    %1 = vector.load %arg2[%c0_1, %c0_2, %c0_3] : memref<2x8x32xf32, #tpu.memory_space<vmem>>, vector<2x8x32xf32>
    %c0_4 = arith.constant 0 : index
    %c0_5 = arith.constant 0 : index
    %c0_6 = arith.constant 0 : index
    %2 = vector.load %arg3[%c0_4, %c0_5, %c0_6] : memref<2x8x32xf32, #tpu.memory_space<vmem>>, vector<2x8x32xf32>
    %c0_7 = arith.constant 0 : index
    %c0_8 = arith.constant 0 : index
    %c0_9 = arith.constant 0 : index
    %3 = vector.load %arg4[%c0_7, %c0_8, %c0_9] : memref<2x4x8xf32, #tpu.memory_space<vmem>>, vector<2x4x8xf32>
    %4 = vector.shape_cast %1 : vector<2x8x32xf32> to vector<16x32xf32>
    %c0_10 = arith.constant 0 : index
    %c0_11 = arith.constant 0 : index
    %5 = vector.load %arg5[%c0_10, %c0_11] : memref<32x32xf32, #tpu.memory_space<vmem>>, vector<32x32xf32>
    %cst = arith.constant dense<0.000000e+00> : vector<16x32xf32>
    %6 = tpu.matmul %4, %5, %cst {dimension_numbers = #tpu.dot_dimension_numbers<[1], [0], [0], [1], [0, 0, 1, 1], [], []>} : vector<16x32xf32>, vector<32x32xf32>, vector<16x32xf32> -> vector<16x32xf32>
    %7 = vector.shape_cast %6 : vector<16x32xf32> to vector<2x8x32xf32>
    %8 = vector.shape_cast %0 : vector<2x32xf32> to vector<2x1x32xf32>
    %c0_12 = arith.constant 0 : index
    %c0_13 = arith.constant 0 : index
    %9 = vector.load %arg6[%c0_12, %c0_13] : memref<4x32xf32, #tpu.memory_space<vmem>>, vector<4x32xf32>
    %10 = vector.shape_cast %9 : vector<4x32xf32> to vector<1x4x32xf32>
    %11 = vector.broadcast %8 : vector<2x1x32xf32> to vector<2x4x32xf32>
    %12 = vector.broadcast %10 : vector<1x4x32xf32> to vector<2x4x32xf32>
    %13 = arith.mulf %11, %12 : vector<2x4x32xf32>
    %cst_14 = arith.constant dense<0.000000e+00> : vector<2x4x8xf32>
    %14 = tpu.matmul %13, %7, %cst_14 {dimension_numbers = #tpu.dot_dimension_numbers<[2], [2], [1], [1], [0, 0, 0, 1, 1, 1], [0], [0]>} : vector<2x4x32xf32>, vector<2x8x32xf32>, vector<2x4x8xf32> -> vector<2x4x8xf32>
    %15 = arith.addf %14, %3 : vector<2x4x8xf32>
    %cst_15 = arith.constant dense<0xFF800000> : vector<2x4xf32>
    %16 = vector.multi_reduction <maximumf>, %15, %cst_15 [2] : vector<2x4x8xf32> to vector<2x4xf32>
    %17 = vector.shape_cast %16 : vector<2x4xf32> to vector<2x4x1xf32>
    %18 = vector.broadcast %17 : vector<2x4x1xf32> to vector<2x4x8xf32>
    %19 = arith.subf %15, %18 : vector<2x4x8xf32>
    %20 = math.exp %19 : vector<2x4x8xf32>
    %cst_16 = arith.constant dense<0.000000e+00> : vector<2x4xf32>
    %21 = vector.multi_reduction <add>, %20, %cst_16 [2] : vector<2x4x8xf32> to vector<2x4xf32>
    %22 = vector.shape_cast %21 : vector<2x4xf32> to vector<2x4x1xf32>
    %23 = tpu.reciprocal %22 {approx = true} : vector<2x4x1xf32> -> vector<2x4x1xf32>
    %24 = arith.mulf %22, %23 : vector<2x4x1xf32>
    %cst_17 = arith.constant 2.000000e+00 : f32
    %25 = vector.broadcast %cst_17 : f32 to vector<2x4x1xf32>
    %26 = arith.subf %25, %24 : vector<2x4x1xf32>
    %27 = arith.mulf %23, %26 : vector<2x4x1xf32>
    %28 = vector.broadcast %27 : vector<2x4x1xf32> to vector<2x4x8xf32>
    %29 = arith.mulf %20, %28 : vector<2x4x8xf32>
    "tpu.trace_start"() <{level = 10 : i32, message = "bhs,bsd->bhd"}> : () -> ()
    %cst_18 = arith.constant dense<0.000000e+00> : vector<2x4x32xf32>
    %30 = tpu.matmul %29, %2, %cst_18 {dimension_numbers = #tpu.dot_dimension_numbers<[2], [1], [1], [2], [0, 0, 0, 1, 1, 2], [0], [0]>} : vector<2x4x8xf32>, vector<2x8x32xf32>, vector<2x4x32xf32> -> vector<2x4x32xf32>
    "tpu.trace_stop"() : () -> ()
    %c0_19 = arith.constant 0 : index
    %c0_20 = arith.constant 0 : index
    %31 = vector.load %arg7[%c0_19, %c0_20] : memref<4x32xf32, #tpu.memory_space<vmem>>, vector<4x32xf32>
    %32 = vector.shape_cast %31 : vector<4x32xf32> to vector<1x4x32xf32>
    %33 = vector.broadcast %32 : vector<1x4x32xf32> to vector<2x4x32xf32>
    %34 = arith.mulf %30, %33 : vector<2x4x32xf32>
    %cst_21 = arith.constant dense<0.000000e+00> : vector<2x32xf32>
    %35 = vector.multi_reduction <add>, %34, %cst_21 [1] : vector<2x4x32xf32> to vector<2x32xf32>
    %c0_22 = arith.constant 0 : index
    %c0_23 = arith.constant 0 : index
    %36 = vector.load %arg8[%c0_22, %c0_23] : memref<2x32xf32, #tpu.memory_space<vmem>>, vector<2x32xf32>
    tpu.vector_store %arg8[%c0_22, %c0_23], %35 {strides = array<i32>} : memref<2x32xf32, #tpu.memory_space<vmem>>, vector<2x32xf32>,
    %c0_24 = arith.constant 0 : index
    %c0_25 = arith.constant 0 : index
    %c0_26 = arith.constant 0 : index
    %37 = vector.load %arg9[%c0_24, %c0_25, %c0_26] : memref<2x4x8xf32, #tpu.memory_space<vmem>>, vector<2x4x8xf32>
    tpu.vector_store %arg9[%c0_24, %c0_25, %c0_26], %29 {strides = array<i32>} : memref<2x4x8xf32, #tpu.memory_space<vmem>>, vector<2x4x8xf32>,
    return
  }
  func.func @transform_0(%arg0: i32) -> (i32, i32) {
    %c0_i32 = arith.constant 0 : i32
    %c0_i32_0 = arith.constant 0 : i32
    return %arg0, %c0_i32 : i32, i32
  }
  func.func @transform_1(%arg0: i32) -> (i32, i32, i32) {
    %c0_i32 = arith.constant 0 : i32
    %c0_i32_0 = arith.constant 0 : i32
    %c0_i32_1 = arith.constant 0 : i32
    return %arg0, %c0_i32, %c0_i32_0 : i32, i32, i32
  }
  func.func @transform_2(%arg0: i32) -> (i32, i32, i32) {
    %c0_i32 = arith.constant 0 : i32
    %c0_i32_0 = arith.constant 0 : i32
    %c0_i32_1 = arith.constant 0 : i32
    return %arg0, %c0_i32, %c0_i32_0 : i32, i32, i32
  }
  func.func @transform_3(%arg0: i32) -> (i32, i32, i32) {
    %c0_i32 = arith.constant 0 : i32
    %c0_i32_0 = arith.constant 0 : i32
    %c0_i32_1 = arith.constant 0 : i32
    return %arg0, %c0_i32, %c0_i32_0 : i32, i32, i32
  }
  func.func @transform_4(%arg0: i32) -> (i32, i32) {
    %c0_i32 = arith.constant 0 : i32
    %c0_i32_0 = arith.constant 0 : i32
    %c0_i32_1 = arith.constant 0 : i32
    return %c0_i32, %c0_i32_0 : i32, i32
  }
  func.func @transform_5(%arg0: i32) -> (i32, i32) {
    %c0_i32 = arith.constant 0 : i32
    %c0_i32_0 = arith.constant 0 : i32
    %c0_i32_1 = arith.constant 0 : i32
    return %c0_i32, %c0_i32_0 : i32, i32
  }
  func.func @transform_6(%arg0: i32) -> (i32, i32) {
    %c0_i32 = arith.constant 0 : i32
    %c0_i32_0 = arith.constant 0 : i32
    %c0_i32_1 = arith.constant 0 : i32
    return %c0_i32, %c0_i32_0 : i32, i32
  }
  func.func @transform_7(%arg0: i32) -> (i32, i32) {
    %c0_i32 = arith.constant 0 : i32
    %c0_i32_0 = arith.constant 0 : i32
    return %arg0, %c0_i32 : i32, i32
  }
  func.func @transform_8(%arg0: i32) -> (i32, i32, i32) {
    %c0_i32 = arith.constant 0 : i32
    %c0_i32_0 = arith.constant 0 : i32
    %c0_i32_1 = arith.constant 0 : i32
    return %arg0, %c0_i32, %c0_i32_0 : i32, i32, i32
  }
}

</mosaic_0001>

<bundles_post_ra>
// kernel: tpu_custom_call.1
= control target key start
LH: loop header
LB: loop body
LE: loop exit
PB: predicated region body
PF: predicated region fallthrough
CT: control target
= control target key end

     0   :  { %14 = vsyncpa [#allocation3], 0  ;;  %s992_s0 = inlined_call_operand.hbm [shape: f32[2,32], index: 0, kind: input, shape index: {}]   ;;  %s993_s1 = inlined_call_operand.hbm [shape: f32[2,8,32], index: 1, kind: input, shape index: {}]   ;;  %s994_s2 = inlined_call_operand.hbm [shape: f32[2,8,32], index: 2, kind: input, shape index: {}]   ;;  %s995_s3 = inlined_call_operand.vmem [shape: f32[2,4,8], index: 3, kind: input, shape index: {}]   ;;  %s996_s4 = inlined_call_operand.hbm [shape: f32[32,32], index: 4, kind: input, shape index: {}]   ;;  %s997_s5 = inlined_call_operand.vmem [shape: f32[4,32], index: 5, kind: input, shape index: {}]   ;;  %s998_s6 = inlined_call_operand.vmem [shape: f32[4,32], index: 6, kind: input, shape index: {}]   ;;  %s999_s7 = inlined_call_operand.hbm [shape: f32[2,32], index: 7, kind: output, shape index: {0}]   ;;  %s1000_s8 = inlined_call_operand.hbm [shape: f32[2,4,8], index: 8, kind: output, shape index: {1}]  }
   0x1   :  { %15 = vsyncpa [#allocation6], 0 }
   0x2   :  { %16 = vsyncpa [#allocation9], 0 }
   0x3   :  { %17 = vsyncpa [#allocation4], 0 }
   0x4   :  { %18 = vsyncpa [#allocation12], 0  ;;  %s825_s27 = smov [#allocation5]   ;;  %s683_s9 = scalar_lea.hbm %s993_s1, 256 }
   0x5   :  { %s34_s28 = sshll.u32 %s825_s27, 4  ;;  %p684_p0 = scmp.ne.s32.totalorder %s993_s1, %s683_s9  ;;  %s35_s28 = int_to_ptr.vmem [resolvable:$true] %s34_s28 }
   0x6   :  { %p687_p1 = scmp.lt.u32.totalorder %s683_s9, %s993_s1 }
   0x8   :  { %p689_p2 = pnand %p687_p1, %p684_p0 }
   0xa   :  { %692 = shalt.err (!%p689_p2)
}
   0xb   :  { %s693_s14 = scalar_lea.vmem %s35_s28, 256  ;;  %p698_p4 = scmp.lt.s32.totalorder %s35_s28, %s35_s28 }
   0xc   :  { %p694_p3 = scmp.ne.s32.totalorder %s35_s28, %s693_s14  ;;  %p699_p5 = scmp.lt.s32.totalorder %s693_s14, %s693_s14 }
   0xe   :  { %p700_p6 = por %p699_p5, %p698_p4 }
  0x10   :  { %p701_p7 = pnand %p700_p6, %p694_p3 }
  0x12   :  { %704 = shalt.err (!%p701_p7)
}
  0x13   :  { %s826_s15 = smov 128   ;;  %s827_s16 = smov 8  }
  0x14   :  { %40 = dma.hbm_to_vmem [thread:$0]  %s993_s1, 256, %s35_s28, [#allocation6], %s826_s15, %s826_s15, %s827_s16  }
  0x15   :  { %s828_s19 = smov [#allocation2]   ;;  %s829_s21 = smov [#allocation7]  }
  0x16   :  { %s25_s20 = sshll.u32 %s828_s19, 4  ;;  %s46_s22 = sshll.u32 %s829_s21, 4  ;;  %s26_s20 = int_to_ptr.vmem [resolvable:$true] %s25_s20  ;;  %s47_s22 = int_to_ptr.vmem [resolvable:$true] %s46_s22 }
  0x17   :  { %s705_s25 = scalar_lea.hbm %s992_s0, 32 }
  0x18   :  { %p706_p8 = scmp.ne.s32.totalorder %s992_s0, %s705_s25  ;;  %p709_p9 = scmp.lt.u32.totalorder %s705_s25, %s992_s0 }
  0x1a   :  { %p711_p10 = pnand %p709_p9, %p706_p8 }
  0x1c   :  { %714 = shalt.err (!%p711_p10)
}
  0x1d   :  { %s715_s1 = scalar_lea.vmem %s26_s20, 32  ;;  %p720_p12 = scmp.lt.s32.totalorder %s26_s20, %s26_s20 }
  0x1e   :  { %p716_p11 = scmp.ne.s32.totalorder %s26_s20, %s715_s1  ;;  %p721_p13 = scmp.lt.s32.totalorder %s715_s1, %s715_s1 }
  0x20   :  { %p722_p0 = por %p721_p13, %p720_p12 }
  0x22   :  { %p723_p1 = pnand %p722_p0, %p716_p11 }
  0x24   :  { %726 = shalt.err (!%p723_p1)
}
  0x25   :  { %28 = dma.hbm_to_vmem [thread:$0]  %s992_s0, 32, %s26_s20, [#allocation3]  }
  0x26   :  { %s727_s12 = scalar_lea.hbm %s994_s2, 256 }
  0x27   :  { %p728_p2 = scmp.ne.s32.totalorder %s994_s2, %s727_s12  ;;  %p731_p3 = scmp.lt.u32.totalorder %s727_s12, %s994_s2 }
  0x29   :  { %p733_p4 = pnand %p731_p3, %p728_p2 }
  0x2b   :  { %736 = shalt.err (!%p733_p4)
}
  0x2c   :  { %s737_s19 = scalar_lea.vmem %s47_s22, 256  ;;  %p742_p6 = scmp.lt.s32.totalorder %s47_s22, %s47_s22 }
  0x2d   :  { %p738_p5 = scmp.ne.s32.totalorder %s47_s22, %s737_s19  ;;  %p743_p7 = scmp.lt.s32.totalorder %s737_s19, %s737_s19 }
  0x2f   :  { %p744_p8 = por %p743_p7, %p742_p6 }
  0x31   :  { %p745_p9 = pnand %p744_p8, %p738_p5 }
  0x33   :  { %748 = shalt.err (!%p745_p9)
}
  0x34   :  { %52 = dma.hbm_to_vmem [thread:$0]  %s994_s2, 256, %s47_s22, [#allocation6], %s826_s15, %s826_s15, %s827_s16  }
  0x35   :  { %s830_s21 = smov [#allocation8]   ;;  %s749_s26 = scalar_lea.hbm %s996_s4, 512 }
  0x36   :  { %s60_s23 = sshll.u32 %s830_s21, 4  ;;  %p750_p10 = scmp.ne.s32.totalorder %s996_s4, %s749_s26  ;;  %s61_s23 = int_to_ptr.vmem [resolvable:$true] %s60_s23 }
  0x37   :  { %p753_p11 = scmp.lt.u32.totalorder %s749_s26, %s996_s4 }
  0x39   :  { %p755_p12 = pnand %p753_p11, %p750_p10 }
  0x3b   :  { %758 = shalt.err (!%p755_p12)
}
  0x3c   :  { %s759_s28 = scalar_lea.vmem %s61_s23, 512  ;;  %p764_p0 = scmp.lt.s32.totalorder %s61_s23, %s61_s23 }
  0x3d   :  { %p760_p13 = scmp.ne.s32.totalorder %s61_s23, %s759_s28  ;;  %p765_p1 = scmp.lt.s32.totalorder %s759_s28, %s759_s28 }
  0x3f   :  { %p766_p2 = por %p765_p1, %p764_p0 }
  0x41   :  { %p767_p3 = pnand %p766_p2, %p760_p13 }
  0x43   :  { %770 = shalt.err (!%p767_p3)
}
  0x44   :  { %66 = dma.hbm_to_vmem [thread:$0]  %s996_s4, 512, %s61_s23, [#allocation9], %s826_s15, %s826_s15, %s827_s16  }
  0x45   :  { %815 = dma.done.wait [#allocation3], 32  }
  0x46   :  { %816 = vsyncadd [#allocation3], 4294967264 }
  0x47   :  { %817 = dma.done.wait [#allocation6], 512  }
  0x48   :  { %818 = vsyncadd [#allocation6], 4294966784 }
  0x49   :  { %819 = dma.done.wait [#allocation9], 512  }
  0x4a   :  { %820 = vsyncadd [#allocation9], 4294966784  ;;  %vm94_vm0 = vcmask 261120   ;;  %v90_v0 = vld [vmem:[#allocation8] sm:$0xff]  ;;  %v91_v1 = vld [vmem:[#allocation8 + $0x8] sm:$0xff]  ;;  %v831_v8 = vmov 0.0   ;;  %v188_v11 = vlaneseq }
  0x4b   :  { %v92_v2 = vld [vmem:[#allocation8 + $0x10] sm:$0xff]  ;;  %v654_v3 = vpack.c.bf16 %v91_v1, %v90_v0  ;;  %v93_v4 = vld [vmem:[#allocation8 + $0x18] sm:$0xff]  ;;  %v84_v5 = vld [vmem:[#allocation5] sm:$0xff]  ;;  %634 = vmatprep.subr.mxu1 %v831_v8  ;;  %vm832_vm1 = vmmov 0   ;;  %v833_v9 = vmov 1966171168  }
  0x4c   :  { %v658_v6 = vpack.c.bf16 %v93_v4, %v92_v2  ;;  %631 = vmatprep.mubr.msk.f32.mxu0 %vm94_vm0, %v84_v5  ;;  %v85_v7 = vld [vmem:[#allocation5 + $0x8] sm:$0xff]  ;;  %636 = vmatprep.mubr.msk.f32.mxu1 %vm832_vm1, %v831_v8  ;;  %v186_v10 = vunpack.c.l.s4 %v833_v9  ;;  %v189_v13 = vshrl.u32 %v188_v11, 7  ;;  %v602_v15 = vld.sshfl [vmem:[#allocation2] sm:$0x11 pattern:$0x75316420] }
  0x4d   :  { %655 = vmatprep.subr.bf16.mxu0 %v654_v3  ;;  %v184_v16 = vcombine.high %v602_v15, %v602_v15  ;;  %v199_v21 = vld [vmem:[%s997_s5] sm:$0xf]  ;;  %vm364_vm2 = vcmask 60416   ;;  %v89_v31 = vld [vmem:[%s995_s3 + $0x4] sm:$0xf]  ;;  %v86_v47 = vld [vmem:[#allocation7] sm:$0xff] }
  0x4e   :  { %657 = vmatpush3.bf16.msra.mxu0 %v654_v3  ;;  %v187_v12 = vunpack.c.0.s8 %v186_v10  ;;  %v202_v18 = vsub.s32 0, %v189_v13  ;;  %v88_v27 = vld [vmem:[%s995_s3] sm:$0xf]  ;;  %v87_v48 = vld [vmem:[#allocation7 + $0x8] sm:$0xff]  ;;  %vm393_vm3 = vcmask 64512   ;;  %s834_s3 = smov [#allocation11]  }
  0x4f   :  { %659 = vmatprep.subr.bf16.mxu0 %v658_v6  ;;  %s582_s11 = sshll.u32 %s834_s3, 4  ;;  %s583_s11 = int_to_ptr.vmem [resolvable:$true] %s582_s11 }
  0x50   :  { %v190_v14 = vsub.s32 %v187_v12, %v189_v13  ;;  %s771_s12 = scalar_lea.vmem %s583_s11, 128  ;;  %p776_p5 = scmp.lt.s32.totalorder %s583_s11, %s583_s11 }
  0x51   :  { %p772_p4 = scmp.ne.s32.totalorder %s583_s11, %s771_s12  ;;  %p777_p6 = scmp.lt.s32.totalorder %s771_s12, %s771_s12 }
  0x52   :  { %661 = vmatpush3.bf16.msra.mxu0 %v658_v6  ;;  %v191_v17 = vrot.slane %v602_v15, %v190_v14  ;;  %v198_v19 = vrot.slane %v184_v16, %v190_v14 }
  0x53   :  { %644 = vmatprep.subr.mxu0 %v831_v8  ;;  %p778_p7 = por %p777_p6, %p776_p5 }
  0x54   :  { %v203_v20 = vrot.slane %v191_v17, %v202_v18  ;;  %v207_v24 = vrot.slane %v198_v19, %v202_v18 }
  0x55   :  { %632 = vmatmul.mubr.msk.f32.vlgmr.msra.gmra.mrb[0].mxu0 %vm94_vm0, %v85_v7  ;;  %p779_p8 = pnand %p778_p7, %p772_p4 }
  0x56   :  { %646 = vmatprep.mubr.msk.f32.mxu0 %vm832_vm1, %v831_v8  ;;  %v210_v25 = vmul.f32 %v203_v20, %v199_v21  ;;  %v211_v26 = vmul.f32 %v207_v24, %v199_v21  ;;  %645 = vmatpush3.msra.mxu0 %v86_v47 }
 0x128   :  { %v633_v22 = vpop.f32.mrb[0].mxu0 }
 0x129   :  { %v167_v23 = vpop.f32.mrb[1].mxu0 }
 0x12a   :  { %635 = vmatpush3.xpose.msk.msra.mxu1 %vm94_vm0, %v167_v23 }
 0x12b   :  { %639 = vmatprep.subr.mxu1 %v831_v8 }
 0x12d   :  { %637 = vmatmul.mubr.msk.f32.vlgmr.msra.gmra.mrb[0].mxu1 %vm94_vm0, %v210_v25 }
 0x12e   :  { %640 = vmatpush3.xpose.msk.msra.mxu1 %vm94_vm0, %v633_v22  ;;  %641 = vmatprep.mubr.msk.f32.mxu1 %vm832_vm1, %v831_v8 }
 0x12f   :  { %649 = vmatprep.subr.mxu1 %v831_v8 }
 0x131   :  { %642 = vmatmul.mubr.msk.f32.vlgmr.msra.gmra.mrb[2].mxu1 %vm94_vm0, %v211_v26 }
 0x132   :  { %651 = vmatprep.mubr.msk.f32.mxu1 %vm832_vm1, %v831_v8  ;;  %650 = vmatpush3.msra.mxu1 %v87_v48 }
 0x200   :  { %v284_v28 = vpop.f32.mrb[0].mxu1 }
 0x201   :  { %v285_v29 = vadd.f32 %v284_v28, %v88_v27  ;;  %v638_v30 = vpop.f32.mrb[1].mxu1 }
 0x203   :  { %v365_v32 = vsel %vm364_vm2, %v285_v29, -inf }
 0x204   :  { %366 = vmax.xlane.f32.xlu0 %v365_v32  ;;  %v360_v33 = vpop.f32.mrb[2].mxu1 }
 0x205   :  { %v361_v34 = vadd.f32 %v360_v33, %v89_v31  ;;  %v643_v35 = vpop.f32.mrb[3].mxu1 }
 0x207   :  { %v368_v36 = vsel %vm364_vm2, %v361_v34, -inf }
 0x208   :  { %369 = vmax.xlane.f32.xlu0 %v368_v36 }
 0x291   :  { %v367_v37 = vpop.xlane.xlu0 %366 }
 0x292   :  { %v371_v38 = vsub.f32 %v285_v29, %v367_v37 }
 0x294   :  { %v373_v39 = vmul.f32 1.442695, %v371_v38 }
 0x295   :  { %v370_v40 = vpop.xlane.xlu0 %369 }
 0x296   :  { %675 = vpow2.f32 %v373_v39  ;;  %v372_v41 = vsub.f32 %v361_v34, %v370_v40 }
 0x298   :  { %v375_v42 = vmul.f32 1.442695, %v372_v41 }
 0x29a   :  { %677 = vpow2.f32 %v375_v42 }
 0x2a0   :  { %v676_v43 = vpop.eup %675 }
 0x2a1   :  { %v377_v44 = vsel %vm364_vm2, %v676_v43, 0.0 }
 0x2a2   :  { %378 = vadd.xlane.f32.xlu1 %v377_v44 }
 0x2a4   :  { %v678_v45 = vpop.eup %677 }
 0x2a5   :  { %v380_v46 = vsel %vm364_vm2, %v678_v45, 0.0 }
 0x2a6   :  { %381 = vadd.xlane.f32.xlu1 %v380_v46 }
 0x32f   :  { %v379_v49 = vpop.xlane.xlu1 %378 }
 0x330   :  { %679 = vrcp.f32 %v379_v49 }
 0x333   :  { %v382_v50 = vpop.xlane.xlu1 %381 }
 0x334   :  { %681 = vrcp.f32 %v382_v50 }
 0x33a   :  { %v680_v51 = vpop.eup %679 }
 0x33b   :  { %v385_v52 = vmul.f32 %v680_v51, %v379_v49 }
 0x33d   :  { %v387_v53 = vsub.f32 2.0, %v385_v52 }
 0x33e   :  { %v682_v54 = vpop.eup %681 }
 0x33f   :  { %v389_v55 = vmul.f32 %v680_v51, %v387_v53  ;;  %v386_v56 = vmul.f32 %v682_v54, %v382_v50 }
 0x341   :  { %v391_v57 = vmul.f32 %v676_v43, %v389_v55  ;;  %v388_v58 = vsub.f32 2.0, %v386_v56 }
 0x343   :  { %565 = vst.msk [vmem:[#allocation11] sm:$0xf] %vm364_vm2, %v391_v57  ;;  %v390_v59 = vmul.f32 %v682_v54, %v388_v58  ;;  %647 = vmatmul.mubr.msk.f32.vlgmr.msra.gmra.mrb[2].mxu0 %vm393_vm3, %v391_v57 }
 0x345   :  { %v392_v60 = vmul.f32 %v678_v45, %v390_v59 }
 0x347   :  { %566 = vst.msk [vmem:[#allocation11 + $0x4] sm:$0xf] %vm364_vm2, %v392_v60  ;;  %652 = vmatmul.mubr.msk.f32.vlgmr.msra.gmra.mrb[4].mxu1 %vm393_vm3, %v392_v60 }
 0x348   :  { %782 = shalt.err (!%p779_p8)
}
 0x349   :  { %s783_s17 = scalar_lea.hbm %s1000_s8, 128 }
 0x34a   :  { %p784_p9 = scmp.ne.s32.totalorder %s1000_s8, %s783_s17  ;;  %p787_p10 = scmp.lt.u32.totalorder %s783_s17, %s1000_s8 }
 0x34c   :  { %p789_p11 = pnand %p787_p10, %p784_p9 }
 0x34e   :  { %792 = shalt.err (!%p789_p11)
}
 0x34f   :  { %s835_s21 = smov 64   ;;  %s836_s23 = smov 4   ;;  %v540_v61 = vld [vmem:[%s998_s6] sm:$0xf]  ;;  %vm543_vm4 = vcmask 257024   ;;  %vm560_vm5 = vcmask 1041409  }
 0x350   :  { %588 = dma.vmem_to_hbm [thread:$0]  %s583_s11, 128, %s1000_s8, [#allocation12], %s835_s21, %s835_s21, %s836_s23   ;;  %vm563_vm6 = vcmask 254976  }
 0x351   :  { %s837_s6 = smov [#allocation10]  }
 0x352   :  { %s573_s8 = sshll.u32 %s837_s6, 4  ;;  %s574_s8 = int_to_ptr.vmem [resolvable:$true] %s573_s8 }
 0x353   :  { %s793_s29 = scalar_lea.vmem %s574_s8, 32  ;;  %p798_p13 = scmp.lt.s32.totalorder %s574_s8, %s574_s8 }
 0x354   :  { %p794_p12 = scmp.ne.s32.totalorder %s574_s8, %s793_s29  ;;  %p799_p0 = scmp.lt.s32.totalorder %s793_s29, %s793_s29 }
 0x356   :  { %p800_p1 = por %p799_p0, %p798_p13 }
 0x358   :  { %p801_p2 = pnand %p800_p1, %p794_p12 }
 0x416   :  { %v463_v62 = vpop.f32.mrb[2].mxu0 }
 0x417   :  { %v541_v63 = vmul.f32 %v540_v61, %v463_v62  ;;  %v648_v0 = vpop.f32.mrb[3].mxu0 }
 0x419   :  { %v544_v1 = vsel %vm543_vm4, %v541_v63, 0.0 }
 0x41a   :  { %v545_v2 = vrot.slane %v544_v1, 4  ;;  %v536_v3 = vpop.f32.mrb[4].mxu1 }
 0x41b   :  { %v542_v4 = vmul.f32 %v540_v61, %v536_v3  ;;  %v653_v5 = vpop.f32.mrb[5].mxu1 }
 0x41c   :  { %v546_v6 = vadd.f32 %v545_v2, %v544_v1 }
 0x41d   :  { %v551_v7 = vsel %vm543_vm4, %v542_v4, 0.0 }
 0x41e   :  { %v547_v8 = vrot.slane %v546_v6, 2  ;;  %v552_v9 = vrot.slane %v551_v7, 4 }
 0x420   :  { %v548_v10 = vadd.f32 %v547_v8, %v546_v6  ;;  %v553_v11 = vadd.f32 %v552_v9, %v551_v7 }
 0x422   :  { %v554_v12 = vrot.slane %v553_v11, 2  ;;  %v549_v13 = vrot.slane %v548_v10, 1 }
 0x424   :  { %v555_v14 = vadd.f32 %v554_v12, %v553_v11  ;;  %v550_v16 = vadd.f32 %v549_v13, %v548_v10 }
 0x426   :  { %v556_v15 = vrot.slane %v555_v14, 1 }
 0x428   :  { %v557_v17 = vadd.f32 %v556_v15, %v555_v14 }
 0x42a   :  { %v561_v18 = vsel %vm560_vm5, %v557_v17, %v550_v16 }
 0x42b   :  { %564 = vst.msk [vmem:[#allocation10] sm:$0x3] %vm563_vm6, %v561_v18 }
 0x42c   :  { %804 = shalt.err (!%p801_p2)
}
 0x42d   :  { %s805_s28 = scalar_lea.hbm %s999_s7, 32 }
 0x42e   :  { %p806_p3 = scmp.ne.s32.totalorder %s999_s7, %s805_s28  ;;  %p809_p4 = scmp.lt.u32.totalorder %s805_s28, %s999_s7 }
 0x430   :  { %p811_p5 = pnand %p809_p4, %p806_p3 }
 0x432   :  { %814 = shalt.err (!%p811_p5)
}
 0x433   :  { %576 = dma.vmem_to_hbm [thread:$0]  %s574_s8, 32, %s999_s7, [#allocation4]  }
 0x434   :  { %821 = dma.done.wait [#allocation4], 32  }
 0x435   :  { %822 = vsyncadd [#allocation4], 4294967264 }
 0x436   :  { %823 = dma.done.wait [#allocation12], 128  }
 0x437   :  { %824 = vsyncadd [#allocation12], 4294967168 }
 0x438   :  { %595 = vsyncpa [#allocation3], 1 }
 0x439   :  { %596 = vsyncpa [#allocation6], 1 }
 0x43a   :  { %597 = vsyncpa [#allocation9], 1 }
 0x43b   :  { %598 = vsyncpa [#allocation4], 1 }
 0x43c   :  { %599 = vsyncpa [#allocation12], 1 }

</bundles_post_ra>
